<compile_context>
chip_gen: v6e
topology: v6e:2x2x1
jax: 0.10.0
libtpu: 0.0.40
codegen_flags: <defaults>
</compile_context>

<pallas_src>
import functools

import jax
import jax.numpy as jnp
from jax import lax
from jax.experimental import pallas as pl
from jax.experimental.pallas import tpu as pltpu


def _round_up(x: int, m: int) -> int:
    return ((x + m - 1) // m) * m


def _pick_row_tile(n_rows8: int, a_pad: int, d_pad: int) -> int:
    """Largest row tile (multiple of 8, <= 512) whose double-buffered VMEM
    footprint stays under a conservative budget valid at the default scoped
    VMEM limit on v5e / v6e / v7x."""
    budget = 12 * 1024 * 1024
    resident = 2 * (a_pad * d_pad + a_pad) * 4          # action set + norms (dbl-buffered)
    tn = max(8, (min(512, n_rows8) // 8) * 8)
    while tn > 8:
        per_tile = 2 * (2 * tn * d_pad) * 4 + 2 * tn * a_pad * 4   # pred+out dbl-buf + sims
        if resident + per_tile <= budget:
            break
        tn = max(8, ((tn // 2) // 8) * 8)
    return tn


def _decoder_kernel(pred_ref, act_ref, an_ref, out_ref, *, a_actual: int):
    # pred_ref: (TN, Dp)   act_ref: (Ap, Dp)   an_ref: (1, Ap) f32   out_ref: (TN, Dp)
    pred = pred_ref[...]
    act = act_ref[...]

    # dots[n, a] = <pred[n], act[a]>  -- MXU, contraction on the last dim of
    # BOTH operands (no materialized act.T / XLU relayout).
    dots = lax.dot_general(pred, act, (((1,), (1,)), ((), ())),
                           preferred_element_type=jnp.float32)           # (TN, Ap)

    predf = pred.astype(jnp.float32)
    pn = jnp.sqrt(jnp.sum(predf * predf, axis=-1, keepdims=True))         # (TN, 1)
    an = an_ref[...]                                                      # (1, Ap), f32

    # torch.cosine_similarity eps semantics: clamp the PRODUCT of the norms.
    denom = jnp.maximum(pn * an, jnp.float32(1e-8))                       # (TN, Ap)
    sims = dots * pl.reciprocal(denom, approx=True)                       # EUP slot

    tn, a_pad = sims.shape
    col = lax.broadcasted_iota(jnp.int32, (tn, a_pad), 1)
    # Padded (all-zero) action columns must never win the argmax.
    sims = jnp.where(col < a_actual, sims, -jnp.inf)

    # First-occurrence argmax over actions, expressed as a one-hot
    # (PyTorch argmax returns the first maximal index).
    row_max = jnp.max(sims, axis=-1, keepdims=True)
    idx = jnp.min(jnp.where(sims == row_max, col, a_pad), axis=-1, keepdims=True)
    onehot = (col == idx).astype(act.dtype)                               # exact 0/1

    # Gather of the winning action rows as a lane-dense MXU matmul.
    out_ref[...] = jnp.dot(onehot, act,
                           preferred_element_type=jnp.float32).astype(out_ref.dtype)


def continous_action_decoder(pred_action: jax.Array, action_set: jax.Array) -> jax.Array:
    """Pallas equivalent of ContinousActionDecoder(action_set).forward(pred_action)."""
    if pred_action.ndim == 2:
        pred_action = pred_action[:, None, :]
    B, S, D = pred_action.shape
    A, D2 = action_set.shape
    assert D == D2, "feature dims of pred_action and action_set must match"

    out_dtype = action_set.dtype
    pred_flat = pred_action.reshape(B * S, D).astype(out_dtype)
    N = B * S

    # Lane-dense padding (128 on the lane axis, 8 on the sublane axis).
    d_pad = _round_up(D, 128)
    a_pad = _round_up(A, 128)
    tn = _pick_row_tile(_round_up(N, 8), a_pad, d_pad)
    n_pad = _round_up(N, tn)

    pred_p = jnp.pad(pred_flat, ((0, n_pad - N), (0, d_pad - D)))
    act_p = jnp.pad(action_set, ((0, a_pad - A), (0, d_pad - D)))
    # Action-set norms hoisted out of the per-tile body (grid-resident row).
    an_p = jnp.sqrt(jnp.sum(act_p.astype(jnp.float32) ** 2, axis=-1))[None, :]

    kernel = functools.partial(_decoder_kernel, a_actual=A)

    out_flat = pl.pallas_call(
        kernel,
        out_shape=jax.ShapeDtypeStruct((n_pad, d_pad), out_dtype),
        grid=(n_pad // tn,),
        in_specs=[
            pl.BlockSpec((tn, d_pad), lambda i: (i, 0)),     # pred rows: pipelined tiles
            pl.BlockSpec((a_pad, d_pad), lambda i: (0, 0)),  # action set: resident
            pl.BlockSpec((1, a_pad), lambda i: (0, 0)),      # action norms: resident
        ],
        out_specs=pl.BlockSpec((tn, d_pad), lambda i: (i, 0)),
        compiler_params=pltpu.CompilerParams(
            dimension_semantics=("parallel",)),              # shard row tiles across TCs (v7x)
    )(pred_p, act_p, an_p)

    return out_flat[:N, :D].reshape(B, S, D)


def _reference(pred_action, action_set):
    """Pure-JAX reference mirroring the PyTorch forward."""
    if pred_action.ndim == 2:
        pred_action = pred_action[:, None, :]
    dots = jnp.einsum("bsd,ad->bsa", pred_action, action_set)
    pn = jnp.linalg.norm(pred_action, axis=-1, keepdims=True)            # (B, S, 1)
    an = jnp.linalg.norm(action_set, axis=-1)[None, None, :]             # (1, 1, A)
    sims = dots / jnp.maximum(pn * an, 1e-8)
    amax = jnp.argmax(sims, axis=-1)                                     # (B, S)
    return action_set[amax]                                              # (B, S, D)


def _cos(x, y):
    num = jnp.sum(x * y, axis=-1)
    den = jnp.maximum(jnp.linalg.norm(x, axis=-1) * jnp.linalg.norm(y, axis=-1), 1e-8)
    return num / den


if __name__ == "__main__":
    key = jax.random.PRNGKey(0)
    k_act, k_pred = jax.random.split(key)

    A, D = 64, 32          # number of pre-embedded actions, embedding dim
    B, S = 2, 4            # batch, sequence of predicted actions

    action_set = jax.random.normal(k_act, (A, D), dtype=jnp.float32)
    pred_action = jax.random.normal(k_pred, (B, S, D), dtype=jnp.float32)

    out = continous_action_decoder(pred_action, action_set)
    out = jax.block_until_ready(out)
    assert out.shape == (B, S, D)

    # Every output row must be an exact member of the action set.
    dist_to_set = jnp.min(
        jnp.max(jnp.abs(out[:, :, None, :] - action_set[None, None, :, :]), axis=-1),
        axis=-1)
    assert bool(jnp.all(dist_to_set <= 1e-6)), "output rows are not action-set members"

    # Match the pure-JAX reference; tolerate near-tie argmax flips caused by
    # the approximate (EUP) reciprocal by requiring the achieved cosine
    # similarity to be within 1e-4 of the reference optimum in that case.
    ref = _reference(pred_action, action_set)
    row_exact = jnp.all(jnp.abs(out - ref) <= 1e-5 * (1.0 + jnp.abs(ref)), axis=-1)
    tie_ok = _cos(pred_action, out) >= _cos(pred_action, ref) - 1e-4
    assert bool(jnp.all(row_exact | tie_ok)), "mismatch vs reference beyond near-tie tolerance"

    print("KERNEL_OK")
</pallas_src>

<mosaic_0001>
module attributes {stable_mosaic.version = 11 : i64} {
  func.func @_decoder_kernel(%arg0: i32, %arg1: memref<8x128xf32, #tpu.memory_space<vmem>>, %arg2: memref<128x128xf32, #tpu.memory_space<vmem>>, %arg3: memref<1x128xf32, #tpu.memory_space<vmem>>, %arg4: memref<8x128xf32, #tpu.memory_space<vmem>>) attributes {dimension_semantics = [#tpu.dimension_semantics<parallel>], iteration_bounds = array<i64: 1>, scalar_prefetch = 0 : i64, scratch_operands = 0 : i64, tpu.core_type = #tpu.core_type<tc>, window_params = [{transform_indices = @transform_0, window_bounds = array<i64: 8, 128>}, {pipeline_mode = #tpu.pipeline_mode<synchronous>, transform_indices = @transform_1, window_bounds = array<i64: 128, 128>}, {pipeline_mode = #tpu.pipeline_mode<synchronous>, transform_indices = @transform_2, window_bounds = array<i64: 1, 128>}, {transform_indices = @transform_3, window_bounds = array<i64: 8, 128>}]} {
    %c0 = arith.constant 0 : index
    %c0_0 = arith.constant 0 : index
    %0 = vector.load %arg1[%c0, %c0_0] : memref<8x128xf32, #tpu.memory_space<vmem>>, vector<8x128xf32>
    %c0_1 = arith.constant 0 : index
    %c0_2 = arith.constant 0 : index
    %1 = vector.load %arg2[%c0_1, %c0_2] : memref<128x128xf32, #tpu.memory_space<vmem>>, vector<128x128xf32>
    %cst = arith.constant dense<0.000000e+00> : vector<8x128xf32>
    %2 = tpu.matmul %0, %1, %cst {dimension_numbers = #tpu.dot_dimension_numbers<[1], [1], [0], [0], [0, 0, 1, 0], [], []>} : vector<8x128xf32>, vector<128x128xf32>, vector<8x128xf32> -> vector<8x128xf32>
    %3 = arith.mulf %0, %0 : vector<8x128xf32>
    %cst_3 = arith.constant dense<0.000000e+00> : vector<8xf32>
    %4 = vector.multi_reduction <add>, %3, %cst_3 [1] : vector<8x128xf32> to vector<8xf32>
    %5 = vector.shape_cast %4 : vector<8xf32> to vector<8x1xf32>
    %6 = math.sqrt %5 : vector<8x1xf32>
    %c0_4 = arith.constant 0 : index
    %c0_5 = arith.constant 0 : index
    %7 = vector.load %arg3[%c0_4, %c0_5] : memref<1x128xf32, #tpu.memory_space<vmem>>, vector<1x128xf32>
    %8 = vector.broadcast %6 : vector<8x1xf32> to vector<8x128xf32>
    %9 = vector.broadcast %7 : vector<1x128xf32> to vector<8x128xf32>
    %10 = arith.mulf %8, %9 : vector<8x128xf32>
    %cst_6 = arith.constant 9.99999993E-9 : f32
    %11 = vector.broadcast %cst_6 : f32 to vector<8x128xf32>
    %12 = arith.maximumf %10, %11 : vector<8x128xf32>
    %13 = tpu.reciprocal %12 {approx = true} : vector<8x128xf32> -> vector<8x128xf32>
    %14 = arith.mulf %2, %13 : vector<8x128xf32>
    %15 = tpu.iota {dimensions = array<i32: 1>} : vector<8x128xi32>
    %c64_i32 = arith.constant 64 : i32
    %16 = vector.broadcast %c64_i32 : i32 to vector<8x128xi32>
    %17 = arith.cmpi slt, %15, %16 : vector<8x128xi32>
    %cst_7 = arith.constant 0xFF800000 : f32
    %18 = vector.broadcast %cst_7 : f32 to vector<8x128xf32>
    %19 = arith.select %17, %14, %18 : vector<8x128xi1>, vector<8x128xf32>
    %cst_8 = arith.constant dense<0xFF800000> : vector<8xf32>
    %20 = vector.multi_reduction <maximumf>, %19, %cst_8 [1] : vector<8x128xf32> to vector<8xf32>
    %21 = vector.shape_cast %20 : vector<8xf32> to vector<8x1xf32>
    %22 = vector.broadcast %21 : vector<8x1xf32> to vector<8x128xf32>
    %23 = arith.cmpf oeq, %19, %22 : vector<8x128xf32>
    %c128_i32 = arith.constant 128 : i32
    %24 = vector.broadcast %c128_i32 : i32 to vector<8x128xi32>
    %25 = arith.select %23, %15, %24 : vector<8x128xi1>, vector<8x128xi32>
    %cst_9 = arith.constant dense<2147483647> : vector<8xi32>
    %26 = vector.multi_reduction <minsi>, %25, %cst_9 [1] : vector<8x128xi32> to vector<8xi32>
    %27 = vector.shape_cast %26 : vector<8xi32> to vector<8x1xi32>
    %28 = vector.broadcast %27 : vector<8x1xi32> to vector<8x128xi32>
    %29 = arith.cmpi eq, %15, %28 : vector<8x128xi32>
    %30 = arith.extui %29 : vector<8x128xi1> to vector<8x128xi32>
    %31 = arith.sitofp %30 : vector<8x128xi32> to vector<8x128xf32>
    %cst_10 = arith.constant dense<0.000000e+00> : vector<8x128xf32>
    %32 = tpu.matmul %31, %1, %cst_10 {dimension_numbers = #tpu.dot_dimension_numbers<[1], [0], [0], [1], [0, 0, 1, 1], [], []>} : vector<8x128xf32>, vector<128x128xf32>, vector<8x128xf32> -> vector<8x128xf32>
    %c0_11 = arith.constant 0 : index
    %c0_12 = arith.constant 0 : index
    %33 = vector.load %arg4[%c0_11, %c0_12] : memref<8x128xf32, #tpu.memory_space<vmem>>, vector<8x128xf32>
    tpu.vector_store %arg4[%c0_11, %c0_12], %32 {strides = array<i32>} : memref<8x128xf32, #tpu.memory_space<vmem>>, vector<8x128xf32>,
    return
  }
  func.func @transform_0(%arg0: i32) -> (i32, i32) {
    %c0_i32 = arith.constant 0 : i32
    %c0_i32_0 = arith.constant 0 : i32
    return %arg0, %c0_i32 : i32, i32
  }
  func.func @transform_1(%arg0: i32) -> (i32, i32) {
    %c0_i32 = arith.constant 0 : i32
    %c0_i32_0 = arith.constant 0 : i32
    %c0_i32_1 = arith.constant 0 : i32
    return %c0_i32, %c0_i32_0 : i32, i32
  }
  func.func @transform_2(%arg0: i32) -> (i32, i32) {
    %c0_i32 = arith.constant 0 : i32
    %c0_i32_0 = arith.constant 0 : i32
    %c0_i32_1 = arith.constant 0 : i32
    return %c0_i32, %c0_i32_0 : i32, i32
  }
  func.func @transform_3(%arg0: i32) -> (i32, i32) {
    %c0_i32 = arith.constant 0 : i32
    %c0_i32_0 = arith.constant 0 : i32
    return %arg0, %c0_i32 : i32, i32
  }
}

</mosaic_0001>

<bundles_post_ra>
// kernel: tpu_custom_call.1
= control target key start
LH: loop header
LB: loop body
LE: loop exit
PB: predicated region body
PF: predicated region fallthrough
CT: control target
= control target key end

     0   :  { %8 = vsyncpa [#allocation3], 0  ;;  %s525_s0 = inlined_call_operand.hbm [shape: f32[8,128], index: 0, kind: input, shape index: {}]   ;;  %s526_s1 = inlined_call_operand.hbm [shape: f32[128,128], index: 1, kind: input, shape index: {}]   ;;  %s527_s2 = inlined_call_operand.vmem [shape: f32[1,128], index: 2, kind: input, shape index: {}]   ;;  %s528_s3 = inlined_call_operand.hbm [shape: f32[8,128], index: 3, kind: output, shape index: {}]  }
   0x1   :  { %9 = vsyncpa [#allocation6], 0 }
   0x2   :  { %10 = vsyncpa [#allocation4], 0  ;;  %s446_s12 = smov [#allocation2]   ;;  %s447_s14 = smov [#allocation5]  }
   0x3   :  { %s17_s13 = sshll.u32 %s446_s12, 4  ;;  %s26_s15 = sshll.u32 %s447_s14, 4  ;;  %s18_s13 = int_to_ptr.vmem [resolvable:$true] %s17_s13  ;;  %s27_s15 = int_to_ptr.vmem [resolvable:$true] %s26_s15 }
   0x4   :  { %s388_s16 = scalar_lea.vmem %s18_s13, 128  ;;  %p393_p1 = scmp.lt.s32.totalorder %s18_s13, %s18_s13 }
   0x5   :  { %p389_p0 = scmp.ne.s32.totalorder %s18_s13, %s388_s16  ;;  %p394_p2 = scmp.lt.s32.totalorder %s388_s16, %s388_s16 }
   0x7   :  { %p395_p3 = por %p394_p2, %p393_p1 }
   0x9   :  { %p396_p4 = pnand %p395_p3, %p389_p0 }
   0xb   :  { %399 = shalt.err (!%p396_p4)
}
   0xc   :  { %20 = dma.hbm_to_vmem [thread:$0]  %s525_s0, 128, %s18_s13, [#allocation3]  }
   0xd   :  { %s408_s19 = scalar_lea.vmem %s27_s15, 2048  ;;  %p413_p6 = scmp.lt.s32.totalorder %s27_s15, %s27_s15 }
   0xe   :  { %p409_p5 = scmp.ne.s32.totalorder %s27_s15, %s408_s19  ;;  %p414_p7 = scmp.lt.s32.totalorder %s408_s19, %s408_s19 }
  0x10   :  { %p415_p8 = por %p414_p7, %p413_p6 }
  0x12   :  { %p416_p9 = pnand %p415_p8, %p409_p5 }
  0x14   :  { %419 = shalt.err (!%p416_p9)
}
  0x15   :  { %s448_s20 = smov 128   ;;  %s449_s21 = smov 8  }
  0x16   :  { %32 = dma.hbm_to_vmem [thread:$0]  %s526_s1, 2048, %s27_s15, [#allocation6], %s448_s20, %s448_s20, %s449_s21  }
  0x17   :  { %440 = dma.done.wait [#allocation3], 128  }
  0x18   :  { %441 = vsyncadd [#allocation3], 4294967168 }
  0x19   :  { %442 = dma.done.wait [#allocation6], 2048  }
  0x1a   :  { %443 = vsyncadd [#allocation6], 4294965248  ;;  %v450_v0 = vmov 0.0   ;;  %vm451_vm0 = vmmov 0   ;;  %v57_v1 = vld [vmem:[#allocation5 + $0x78] sm:$0xff]  ;;  %v56_v2 = vld [vmem:[#allocation5 + $0x70] sm:$0xff]  ;;  %v149_v28 = vlaneseq }
  0x1b   :  { %298 = vmatprep.subr.mxu0 %v450_v0  ;;  %330 = vmatprep.mubr.msk.f32.mxu0 %vm451_vm0, %v450_v0  ;;  %v55_v3 = vld [vmem:[#allocation5 + $0x68] sm:$0xff]  ;;  %v487_v4 = vld [vmem:[#allocation2] sm:$0xff]  ;;  %v54_v5 = vld [vmem:[#allocation5 + $0x60] sm:$0xff]  ;;  %v452_v48 = vmov 1.0  }
  0x1c   :  { %333 = vmatprep.subr.mxu1 %v450_v0  ;;  %365 = vmatprep.mubr.msk.f32.mxu1 %vm451_vm0, %v450_v0  ;;  %v128_v6 = vmul.f32 %v487_v4, %v487_v4  ;;  %v53_v7 = vld [vmem:[#allocation5 + $0x58] sm:$0xff]  ;;  %v52_v8 = vld [vmem:[#allocation5 + $0x50] sm:$0xff]  ;;  %v51_v9 = vld [vmem:[#allocation5 + $0x48] sm:$0xff]  ;;  %v150_v29 = vand.u32 127, %v149_v28 }
  0x1d   :  { %299 = vmatpush3.xpose.msra.mxu0 %v57_v1  ;;  %334 = vmatpush3.msra.mxu1 %v57_v1  ;;  %v50_v10 = vld [vmem:[#allocation5 + $0x40] sm:$0xff]  ;;  %v49_v11 = vld [vmem:[#allocation5 + $0x38] sm:$0xff]  ;;  %v48_v12 = vld [vmem:[#allocation5 + $0x30] sm:$0xff] }
  0x1e   :  { %300 = vmatprep.subr.mxu0 %v450_v0  ;;  %335 = vmatprep.subr.mxu1 %v450_v0  ;;  %v47_v13 = vld [vmem:[#allocation5 + $0x28] sm:$0xff]  ;;  %v46_v14 = vld [vmem:[#allocation5 + $0x20] sm:$0xff]  ;;  %v45_v15 = vld [vmem:[#allocation5 + $0x18] sm:$0xff]  ;;  %vm151_vm3 = vcmp.lt.s32.totalorder %v150_v29, 64 }
  0x1f   :  { %336 = vmatpush3.msra.mxu1 %v56_v2  ;;  %129 = vadd.xlane.f32.xlu0 %v128_v6  ;;  %v44_v16 = vld [vmem:[#allocation5 + $0x10] sm:$0xff]  ;;  %v43_v17 = vld [vmem:[#allocation5 + $0x8] sm:$0xff]  ;;  %v42_v18 = vld [vmem:[#allocation5] sm:$0xff] }
  0x20   :  { %337 = vmatprep.subr.mxu1 %v450_v0  ;;  %v261_v24 = vld [vmem:[%s527_s2] ss:$0 sm:$0xff]  ;;  %s453_s2 = smov [#allocation7]  }
  0x21   :  { %301 = vmatpush3.xpose.msra.mxu0 %v56_v2  ;;  %338 = vmatpush3.msra.mxu1 %v55_v3  ;;  %s251_s24 = sshll.u32 %s453_s2, 4  ;;  %s252_s24 = int_to_ptr.vmem [resolvable:$true] %s251_s24 }
  0x22   :  { %302 = vmatprep.subr.mxu0 %v450_v0  ;;  %339 = vmatprep.subr.mxu1 %v450_v0  ;;  %s420_s25 = scalar_lea.vmem %s252_s24, 128  ;;  %p425_p11 = scmp.lt.s32.totalorder %s252_s24, %s252_s24 }
  0x23   :  { %340 = vmatpush3.msra.mxu1 %v54_v5  ;;  %p421_p10 = scmp.ne.s32.totalorder %s252_s24, %s420_s25  ;;  %p426_p12 = scmp.lt.s32.totalorder %s420_s25, %s420_s25 }
  0x24   :  { %341 = vmatprep.subr.mxu1 %v450_v0 }
  0x25   :  { %303 = vmatpush3.xpose.msra.mxu0 %v55_v3  ;;  %342 = vmatpush3.msra.mxu1 %v53_v7  ;;  %p427_p13 = por %p426_p12, %p425_p11 }
  0x26   :  { %304 = vmatprep.subr.mxu0 %v450_v0  ;;  %343 = vmatprep.subr.mxu1 %v450_v0 }
  0x27   :  { %344 = vmatpush3.msra.mxu1 %v52_v8  ;;  %p428_p0 = pnand %p427_p13, %p421_p10 }
  0x28   :  { %345 = vmatprep.subr.mxu1 %v450_v0 }
  0x29   :  { %305 = vmatpush3.xpose.msra.mxu0 %v54_v5  ;;  %346 = vmatpush3.msra.mxu1 %v51_v9 }
  0x2a   :  { %306 = vmatprep.subr.mxu0 %v450_v0  ;;  %347 = vmatprep.subr.mxu1 %v450_v0 }
  0x2b   :  { %348 = vmatpush3.msra.mxu1 %v50_v10 }
  0x2c   :  { %349 = vmatprep.subr.mxu1 %v450_v0 }
  0x2d   :  { %307 = vmatpush3.xpose.msra.mxu0 %v53_v7  ;;  %350 = vmatpush3.msra.mxu1 %v49_v11 }
  0x2e   :  { %308 = vmatprep.subr.mxu0 %v450_v0  ;;  %351 = vmatprep.subr.mxu1 %v450_v0 }
  0x2f   :  { %352 = vmatpush3.msra.mxu1 %v48_v12 }
  0x30   :  { %353 = vmatprep.subr.mxu1 %v450_v0 }
  0x31   :  { %309 = vmatpush3.xpose.msra.mxu0 %v52_v8  ;;  %354 = vmatpush3.msra.mxu1 %v47_v13 }
  0x32   :  { %310 = vmatprep.subr.mxu0 %v450_v0  ;;  %355 = vmatprep.subr.mxu1 %v450_v0 }
  0x33   :  { %356 = vmatpush3.msra.mxu1 %v46_v14 }
  0x34   :  { %357 = vmatprep.subr.mxu1 %v450_v0 }
  0x35   :  { %311 = vmatpush3.xpose.msra.mxu0 %v51_v9  ;;  %358 = vmatpush3.msra.mxu1 %v45_v15 }
  0x36   :  { %312 = vmatprep.subr.mxu0 %v450_v0  ;;  %359 = vmatprep.subr.mxu1 %v450_v0 }
  0x37   :  { %360 = vmatpush3.msra.mxu1 %v44_v16 }
  0x38   :  { %361 = vmatprep.subr.mxu1 %v450_v0 }
  0x39   :  { %313 = vmatpush3.xpose.msra.mxu0 %v50_v10  ;;  %362 = vmatpush3.msra.mxu1 %v43_v17 }
  0x3a   :  { %314 = vmatprep.subr.mxu0 %v450_v0  ;;  %363 = vmatprep.subr.mxu1 %v450_v0 }
  0x3b   :  { %364 = vmatpush3.msra.mxu1 %v42_v18 }
  0x3d   :  { %315 = vmatpush3.xpose.msra.mxu0 %v49_v11 }
  0x3e   :  { %316 = vmatprep.subr.mxu0 %v450_v0 }
  0x41   :  { %317 = vmatpush3.xpose.msra.mxu0 %v48_v12 }
  0x42   :  { %318 = vmatprep.subr.mxu0 %v450_v0 }
  0x45   :  { %319 = vmatpush3.xpose.msra.mxu0 %v47_v13 }
  0x46   :  { %320 = vmatprep.subr.mxu0 %v450_v0 }
  0x49   :  { %321 = vmatpush3.xpose.msra.mxu0 %v46_v14 }
  0x4a   :  { %322 = vmatprep.subr.mxu0 %v450_v0 }
  0x4d   :  { %323 = vmatpush3.xpose.msra.mxu0 %v45_v15 }
  0x4e   :  { %324 = vmatprep.subr.mxu0 %v450_v0 }
  0x51   :  { %325 = vmatpush3.xpose.msra.mxu0 %v44_v16 }
  0x52   :  { %326 = vmatprep.subr.mxu0 %v450_v0 }
  0x55   :  { %327 = vmatpush3.xpose.msra.mxu0 %v43_v17 }
  0x56   :  { %328 = vmatprep.subr.mxu0 %v450_v0 }
  0x59   :  { %329 = vmatpush3.xpose.msra.mxu0 %v42_v18 }
  0x5c   :  { %331 = vmatmul.mubr.f32.vlgmr.msra.gmra.mxu0 %v487_v4 }
  0xa8   :  { %v130_v19 = vpop.xlane.xlu0 %129 }
  0xa9   :  { %376 = vrsqrt.f32 %v130_v19  ;;  %vm133_vm1 = vcmp.eq.f32.partialorder %v130_v19, inf  ;;  %v136_v22 = vand.u32 2147483648, %v130_v19  ;;  %vm135_vm2 = vcmp.eq.f32.partialorder %v130_v19, 0.0 }
  0xb6   :  { %v377_v20 = vpop.eup %376 }
  0xb7   :  { %v132_v21 = vmul.f32 %v377_v20, %v130_v19 }
  0xb9   :  { %v134_v23 = vsel %vm133_vm1, %v130_v19, %v132_v21 }
  0xba   :  { %v137_v25 = vsel %vm135_vm2, %v136_v22, %v134_v23 }
  0xbb   :  { %v145_v26 = vmul.f32 %v261_v24, %v137_v25 }
  0xbd   :  { %v146_v27 = vmax.f32 %v145_v26, 1e-08 }
  0xbf   :  { %378 = vrcp.f32 %v146_v27 }
  0xcc   :  { %v379_v30 = vpop.eup %378 }
 0x11c   :  { %v124_v31 = vpop.f32.mrf.mxu0 }
 0x11d   :  { %v148_v32 = vmul.f32 %v379_v30, %v124_v31 }
 0x11e   :  { %v332_v33 = vpop.f32.mrf.mxu0 }
 0x11f   :  { %v152_v34 = vsel %vm151_vm3, %v148_v32, -inf }
 0x120   :  { %153 = vmax.xlane.f32.xlu0 %v152_v34 }
 0x1a9   :  { %v154_v35 = vpop.xlane.xlu0 %153 }
 0x1aa   :  { %vm155_vm4 = vcmp.eq.f32.partialorder %v152_v34, %v154_v35 }
 0x1ab   :  { %v156_v36 = vsel %vm155_vm4, %v150_v29, 128 }
 0x1ac   :  { %v158_v37 = vshra.s32 %v156_v36, 16  ;;  %v157_v39 = vand.u32 65535, %v156_v36 }
 0x1ae   :  { %v160_v38 = vcvt.s32.f32 %v158_v37  ;;  %v159_v41 = vcvt.s32.f32 %v157_v39 }
 0x1b0   :  { %161 = vmin.xlane.f32.xlu1 %v160_v38 }
 0x239   :  { %v162_v40 = vpop.xlane.xlu1 %161 }
 0x23a   :  { %vm163_vm5 = vcmp.eq.f32.partialorder %v160_v38, %v162_v40  ;;  %v168_v43 = vcvt.f32.s32 %v162_v40 }
 0x23b   :  { %v164_v42 = vsel %vm163_vm5, %v159_v41, inf }
 0x23c   :  { %165 = vmin.xlane.f32.xlu1 %v164_v42  ;;  %v169_v45 = vshll.u32 %v168_v43, 16 }
 0x2c5   :  { %v166_v44 = vpop.xlane.xlu1 %165 }
 0x2c6   :  { %v167_v46 = vcvt.f32.s32 %v166_v44 }
 0x2c8   :  { %v170_v47 = vadd.s32 %v169_v45, %v167_v46 }
 0x2ca   :  { %vm171_vm6 = vcmp.eq.s32.totalorder %v150_v29, %v170_v47 }
 0x2cb   :  { %366 = vmatmul.mubr.msk.f32.vlgmr.msra.gmra.mxu1 %vm171_vm6, %v452_v48 }
 0x38b   :  { %v240_v49 = vpop.f32.mrf.mxu1 }
 0x38c   :  { %244 = vst [vmem:[#allocation7] sm:$0xff] %v240_v49 }
 0x38d   :  { %v367_v50 = vpop.f32.mrf.mxu1 }
 0x38e   :  { %431 = shalt.err (!%p428_p0)
}
 0x38f   :  { %254 = dma.vmem_to_hbm [thread:$0]  %s252_s24, 128, %s528_s3, [#allocation4]  }
 0x390   :  { %444 = dma.done.wait [#allocation4], 128  }
 0x391   :  { %445 = vsyncadd [#allocation4], 4294967168 }
 0x392   :  { %258 = vsyncpa [#allocation3], 1 }
 0x393   :  { %259 = vsyncpa [#allocation6], 1 }
 0x394   :  { %260 = vsyncpa [#allocation4], 1 }

</bundles_post_ra>
